<compile_context>
chip_gen: v7x
topology: tpu7x:2x2x1
jax: 0.10.0
libtpu: 0.0.40
codegen_flags: <defaults>
</compile_context>

<pallas_src>
import jax
import jax.numpy as jnp
import numpy as np
from jax.experimental import pallas as pl
from jax.experimental.pallas import tpu as pltpu  # noqa: F401  (kept for forward-looking tiling params)

# Small but TPU-friendly shapes (lane-dense FEAT=128, sublane-aligned node counts).
N_SRC = 128      # source nodes (DGL convention: dst nodes come first among src)
N_DST = 64       # destination nodes
FEAT = 128       # feature dim -> full 128-lane vreg, unmasked stores


# ---------------------------------------------------------------------------
# Kernel: whole mean aggregation in one block.
# ---------------------------------------------------------------------------
def mean_agg_kernel(adj_ref, h_ref, out_ref):
    adj = adj_ref[...]                                    # (N_DST, N_SRC), 0/1 f32
    deg = jnp.sum(adj, axis=1, keepdims=True)             # (N_DST, 1) in-degree
    summed = jnp.dot(adj, h_ref[...],                     # MXU: (N_DST, FEAT) f32
                     preferred_element_type=jnp.float32)
    # One EUP reciprocal per dst row + one VPU multiply per element.
    # Zero-in-degree rows: sum is 0, clamp keeps divisor 1 -> exact 0 (DGL fn.mean).
    inv = pl.reciprocal(jnp.maximum(deg, 1.0), approx=False)
    out_ref[...] = summed * inv


# ---------------------------------------------------------------------------
# Wrapper: single block, no grid.
# ---------------------------------------------------------------------------
@jax.jit
def mean_aggregator(adj, h):
    return pl.pallas_call(
        mean_agg_kernel,
        out_shape=jax.ShapeDtypeStruct((N_DST, FEAT), jnp.float32),
        in_specs=[
            pl.BlockSpec((N_DST, N_SRC), lambda: (0, 0)),   # adj, fully resident
            pl.BlockSpec((N_SRC, FEAT), lambda: (0, 0)),    # h,   fully resident
        ],
        out_specs=pl.BlockSpec((N_DST, FEAT), lambda: (0, 0)),
    )(adj, h)


# Pure-JAX reference (what the PyTorch module computes).
def ref_mean_aggregator(adj, h):
    deg = jnp.sum(adj, axis=1, keepdims=True)
    return (adj @ h) / jnp.maximum(deg, 1.0)


if __name__ == "__main__":
    key = jax.random.PRNGKey(0)
    k_adj, k_h = jax.random.split(key)

    # DGL block -> dense 0/1 adjacency (dst x src). Give every dst node at least
    # one in-neighbor (itself, since dst nodes are the first src nodes); not
    # required for correctness — zero-degree rows are handled.
    adj = jax.random.bernoulli(k_adj, 0.25, (N_DST, N_SRC)).astype(jnp.float32)
    adj = adj.at[jnp.arange(N_DST), jnp.arange(N_DST)].set(1.0)

    # Source node features h (src-major, feature-minor), float32.
    h = jax.random.normal(k_h, (N_SRC, FEAT), dtype=jnp.float32)

    neigh = jax.block_until_ready(mean_aggregator(adj, h))

    ref = ref_mean_aggregator(adj, h)
    assert neigh.shape == (N_DST, FEAT)
    assert np.allclose(np.asarray(neigh), np.asarray(ref), atol=1e-5, rtol=1e-5)

    print("KERNEL_OK")
</pallas_src>

<mosaic_0001>
module attributes {stable_mosaic.version = 11 : i64} {
  func.func @mean_agg_kernel(%arg0: memref<64x128xf32, #tpu.memory_space<vmem>>, %arg1: memref<128x128xf32, #tpu.memory_space<vmem>>, %arg2: memref<64x128xf32, #tpu.memory_space<vmem>>) attributes {dimension_semantics = [], scalar_prefetch = 0 : i64, scratch_operands = 0 : i64, tpu.core_type = #tpu.core_type<tc>} {
    %c0 = arith.constant 0 : index
    %c0_0 = arith.constant 0 : index
    %0 = vector.load %arg0[%c0, %c0_0] : memref<64x128xf32, #tpu.memory_space<vmem>>, vector<64x128xf32>
    %cst = arith.constant dense<0.000000e+00> : vector<64xf32>
    %1 = vector.multi_reduction <add>, %0, %cst [1] : vector<64x128xf32> to vector<64xf32>
    %2 = vector.shape_cast %1 : vector<64xf32> to vector<64x1xf32>
    %c0_1 = arith.constant 0 : index
    %c0_2 = arith.constant 0 : index
    %3 = vector.load %arg1[%c0_1, %c0_2] : memref<128x128xf32, #tpu.memory_space<vmem>>, vector<128x128xf32>
    %cst_3 = arith.constant dense<0.000000e+00> : vector<64x128xf32>
    %4 = tpu.matmul %0, %3, %cst_3 {dimension_numbers = #tpu.dot_dimension_numbers<[1], [0], [0], [1], [0, 0, 1, 1], [], []>} : vector<64x128xf32>, vector<128x128xf32>, vector<64x128xf32> -> vector<64x128xf32>
    %cst_4 = arith.constant 1.000000e+00 : f32
    %5 = vector.broadcast %cst_4 : f32 to vector<64x1xf32>
    %6 = arith.maximumf %2, %5 : vector<64x1xf32>
    %7 = tpu.reciprocal %6 : vector<64x1xf32> -> vector<64x1xf32>
    %8 = vector.broadcast %7 : vector<64x1xf32> to vector<64x128xf32>
    %9 = arith.mulf %4, %8 : vector<64x128xf32>
    %c0_5 = arith.constant 0 : index
    %c0_6 = arith.constant 0 : index
    %10 = vector.load %arg2[%c0_5, %c0_6] : memref<64x128xf32, #tpu.memory_space<vmem>>, vector<64x128xf32>
    tpu.vector_store %arg2[%c0_5, %c0_6], %9 {strides = array<i32>} : memref<64x128xf32, #tpu.memory_space<vmem>>, vector<64x128xf32>,
    return
  }
}

</mosaic_0001>

<bundles_post_ra>
// kernel: mean_aggregator.1
= control target key start
LH: loop header
LB: loop body
LE: loop exit
PB: predicated region body
PF: predicated region fallthrough
CT: control target
= control target key end

     0   :  { %7 = vsyncpa [#allocation3], 0  ;;  %s509_s0 = inlined_call_operand.hbm [shape: f32[64,128], index: 0, kind: input, shape index: {}]   ;;  %s510_s1 = inlined_call_operand.hbm [shape: f32[128,128], index: 1, kind: input, shape index: {}]   ;;  %s511_s2 = inlined_call_operand.hbm [shape: f32[64,128], index: 2, kind: output, shape index: {}]  }
   0x1   :  { %8 = vsyncpa [#allocation6], 0 }
   0x2   :  { %9 = vsyncpa [#allocation4], 0  ;;  %s444_s9 = smov [#allocation2]   ;;  %s372_s13 = scalar_lea.hbm %s509_s0, 1024 }
   0x3   :  { %s15_s10 = sshll.u32 %s444_s9, 4  ;;  %p373_p0 = scmp.ne.s32.totalorder %s509_s0, %s372_s13  ;;  %s16_s10 = int_to_ptr.vmem [resolvable:$true] %s15_s10 }
   0x4   :  { %p376_p1 = scmp.lt.u32.totalorder %s372_s13, %s509_s0 }
   0x6   :  { %p378_p2 = pnand %p376_p1, %p373_p0 }
   0x8   :  { %381 = shalt.err (!%p378_p2)
}
   0x9   :  { %s382_s18 = scalar_lea.vmem %s16_s10, 1024  ;;  %p387_p4 = scmp.lt.s32.totalorder %s16_s10, %s16_s10 }
   0xa   :  { %p383_p3 = scmp.ne.s32.totalorder %s16_s10, %s382_s18  ;;  %p388_p5 = scmp.lt.s32.totalorder %s382_s18, %s382_s18 }
   0xc   :  { %p389_p6 = por %p388_p5, %p387_p4 }
   0xe   :  { %p390_p7 = pnand %p389_p6, %p383_p3 }
  0x10   :  { %393 = shalt.err (!%p390_p7)
}
  0x11   :  { %s445_s19 = smov 128   ;;  %s446_s20 = smov 8  }
  0x12   :  { %21 = dma.hbm_to_vmem [thread:$0]  %s509_s0, 1024, %s16_s10, [#allocation3], %s445_s19, %s445_s19, %s446_s20  }
  0x13   :  { %s447_s23 = smov [#allocation5]   ;;  %s394_s27 = scalar_lea.hbm %s510_s1, 2048 }
  0x14   :  { %s27_s24 = sshll.u32 %s447_s23, 4  ;;  %p395_p8 = scmp.ne.s32.totalorder %s510_s1, %s394_s27  ;;  %s28_s24 = int_to_ptr.vmem [resolvable:$true] %s27_s24 }
  0x15   :  { %p398_p9 = scmp.lt.u32.totalorder %s394_s27, %s510_s1 }
  0x17   :  { %p400_p10 = pnand %p398_p9, %p395_p8 }
  0x19   :  { %403 = shalt.err (!%p400_p10)
}
  0x1a   :  { %s404_s4 = scalar_lea.vmem %s28_s24, 2048  ;;  %p409_p12 = scmp.lt.s32.totalorder %s28_s24, %s28_s24 }
  0x1b   :  { %p405_p11 = scmp.ne.s32.totalorder %s28_s24, %s404_s4  ;;  %p410_p13 = scmp.lt.s32.totalorder %s404_s4, %s404_s4 }
  0x1d   :  { %p411_p0 = por %p410_p13, %p409_p12 }
  0x1f   :  { %p412_p1 = pnand %p411_p0, %p405_p11 }
  0x21   :  { %415 = shalt.err (!%p412_p1)
}
  0x22   :  { %33 = dma.hbm_to_vmem [thread:$0]  %s510_s1, 2048, %s28_s24, [#allocation6], %s445_s19, %s445_s19, %s446_s20  }
  0x23   :  { %438 = dma.done.wait [#allocation3], 1024  }
  0x24   :  { %439 = vsyncadd [#allocation3], 4294966272 }
  0x25   :  { %440 = dma.done.wait [#allocation6], 2048  }
  0x26   :  { %441 = vsyncadd [#allocation6], 4294965248  ;;  %v64_v0 = vld [vmem:[#allocation5] sm:$0xff]  ;;  %v65_v1 = vld [vmem:[#allocation5 + $0x8] sm:$0xff]  ;;  %s448_s1 = smov [#allocation7]  }
  0x27   :  { %v66_v2 = vld [vmem:[#allocation5 + $0x10] sm:$0xff]  ;;  %v303_v3 = vpack.c.bf16 %v65_v1, %v64_v0  ;;  %v67_v4 = vld [vmem:[#allocation5 + $0x18] sm:$0xff]  ;;  %v68_v6 = vld [vmem:[#allocation5 + $0x20] sm:$0xff]  ;;  %s222_s6 = sshll.u32 %s448_s1, 4  ;;  %s223_s6 = int_to_ptr.vmem [resolvable:$true] %s222_s6 }
  0x28   :  { %v307_v5 = vpack.c.bf16 %v67_v4, %v66_v2  ;;  %v69_v7 = vld [vmem:[#allocation5 + $0x28] sm:$0xff]  ;;  %v40_v9 = vld [vmem:[#allocation2] sm:$0xff]  ;;  %v70_v11 = vld [vmem:[#allocation5 + $0x30] sm:$0xff]  ;;  %s416_s7 = scalar_lea.vmem %s223_s6, 1024  ;;  %p421_p3 = scmp.lt.s32.totalorder %s223_s6, %s223_s6 }
  0x29   :  { %304 = vmatprep.subr.bf16.mxu0 %v303_v3  ;;  %335 = vmatprep.subr.bf16.mxu1 %v303_v3  ;;  %v311_v8 = vpack.c.bf16 %v69_v7, %v68_v6  ;;  %v44_v10 = vld [vmem:[#allocation2 + $0x20] sm:$0xff]  ;;  %v71_v12 = vld [vmem:[#allocation5 + $0x38] sm:$0xff]  ;;  %v42_v13 = vld [vmem:[#allocation2 + $0x10] sm:$0xff]  ;;  %p417_p2 = scmp.ne.s32.totalorder %s223_s6, %s416_s7  ;;  %p422_p4 = scmp.lt.s32.totalorder %s416_s7, %s416_s7 }
  0x2a   :  { %306 = vmatpush3.bf16.msra.mxu0 %v303_v3  ;;  %343 = vmatpush3.bf16.msra.mxu1 %v303_v3  ;;  %v315_v14 = vpack.c.bf16 %v71_v12, %v70_v11  ;;  %v72_v15 = vld [vmem:[#allocation5 + $0x40] sm:$0xff]  ;;  %v73_v16 = vld [vmem:[#allocation5 + $0x48] sm:$0xff]  ;;  %v43_v18 = vld [vmem:[#allocation2 + $0x18] sm:$0xff] }
  0x2b   :  { %308 = vmatprep.subr.bf16.mxu0 %v307_v5  ;;  %336 = vmatprep.subr.bf16.mxu1 %v307_v5  ;;  %v41_v17 = vld [vmem:[#allocation2 + $0x8] sm:$0xff]  ;;  %v319_v19 = vpack.c.bf16 %v73_v16, %v72_v15  ;;  %v74_v20 = vld [vmem:[#allocation5 + $0x50] sm:$0xff]  ;;  %v75_v21 = vld [vmem:[#allocation5 + $0x58] sm:$0xff]  ;;  %p423_p5 = por %p422_p4, %p421_p3 }
  0x2c   :  { %291 = vmatprep.mubr.f32.mxu0 %v40_v9  ;;  %297 = vmatprep.mubr.f32.mxu1 %v44_v10  ;;  %v45_v22 = vld [vmem:[#allocation2 + $0x28] sm:$0xff]  ;;  %v323_v23 = vpack.c.bf16 %v75_v21, %v74_v20  ;;  %v76_v24 = vld [vmem:[#allocation5 + $0x60] sm:$0xff]  ;;  %v46_v26 = vld [vmem:[#allocation2 + $0x30] sm:$0xff] }
  0x2d   :  { %52 = vadd.xlane.f32.xlu1 %v42_v13  ;;  %48 = vadd.xlane.f32.xlu0 %v40_v9  ;;  %v77_v25 = vld [vmem:[#allocation5 + $0x68] sm:$0xff]  ;;  %v47_v27 = vld [vmem:[#allocation2 + $0x38] sm:$0xff]  ;;  %v78_v29 = vld [vmem:[#allocation5 + $0x70] sm:$0xff]  ;;  %p424_p6 = pnand %p423_p5, %p417_p2 }
  0x2e   :  { %310 = vmatpush3.bf16.msra.mxu0 %v307_v5  ;;  %344 = vmatpush3.bf16.msra.mxu1 %v307_v5  ;;  %v327_v28 = vpack.c.bf16 %v77_v25, %v76_v24  ;;  %v79_v30 = vld [vmem:[#allocation5 + $0x78] sm:$0xff] }
  0x2f   :  { %312 = vmatprep.subr.bf16.mxu0 %v311_v8  ;;  %337 = vmatprep.subr.bf16.mxu1 %v311_v8  ;;  %v331_v31 = vpack.c.bf16 %v79_v30, %v78_v29 }
  0x31   :  { %54 = vadd.xlane.f32.xlu1 %v43_v18  ;;  %50 = vadd.xlane.f32.xlu0 %v41_v17 }
  0x32   :  { %314 = vmatpush3.bf16.msra.mxu0 %v311_v8  ;;  %345 = vmatpush3.bf16.msra.mxu1 %v311_v8 }
  0x33   :  { %316 = vmatprep.subr.bf16.mxu0 %v315_v14  ;;  %338 = vmatprep.subr.bf16.mxu1 %v315_v14 }
  0x35   :  { %58 = vadd.xlane.f32.xlu1 %v45_v22  ;;  %56 = vadd.xlane.f32.xlu0 %v44_v10 }
  0x36   :  { %318 = vmatpush3.bf16.msra.mxu0 %v315_v14  ;;  %346 = vmatpush3.bf16.msra.mxu1 %v315_v14 }
  0x37   :  { %320 = vmatprep.subr.bf16.mxu0 %v319_v19  ;;  %339 = vmatprep.subr.bf16.mxu1 %v319_v19 }
  0x39   :  { %62 = vadd.xlane.f32.xlu1 %v47_v27  ;;  %60 = vadd.xlane.f32.xlu0 %v46_v26 }
  0x3a   :  { %322 = vmatpush3.bf16.msra.mxu0 %v319_v19  ;;  %347 = vmatpush3.bf16.msra.mxu1 %v319_v19 }
  0x3b   :  { %324 = vmatprep.subr.bf16.mxu0 %v323_v23  ;;  %340 = vmatprep.subr.bf16.mxu1 %v323_v23 }
  0x3e   :  { %326 = vmatpush3.bf16.msra.mxu0 %v323_v23  ;;  %348 = vmatpush3.bf16.msra.mxu1 %v323_v23 }
  0x3f   :  { %328 = vmatprep.subr.bf16.mxu0 %v327_v28  ;;  %341 = vmatprep.subr.bf16.mxu1 %v327_v28 }
  0x42   :  { %330 = vmatpush3.bf16.msra.mxu0 %v327_v28  ;;  %349 = vmatpush3.bf16.msra.mxu1 %v327_v28 }
  0x43   :  { %332 = vmatprep.subr.bf16.mxu0 %v331_v31  ;;  %342 = vmatprep.subr.bf16.mxu1 %v331_v31 }
  0x46   :  { %334 = vmatpush3.bf16.msra.mxu0 %v331_v31  ;;  %350 = vmatpush3.bf16.msra.mxu1 %v331_v31 }
  0x49   :  { %292 = vmatmul.mubr.f32.vlgmr.msra.gmra.mrb[0].mxu0 %v41_v17  ;;  %298 = vmatmul.mubr.f32.vlgmr.msra.gmra.mrb[0].mxu1 %v45_v22 }
  0x4a   :  { %294 = vmatprep.mubr.f32.mxu0 %v42_v13  ;;  %300 = vmatprep.mubr.f32.mxu1 %v46_v26 }
  0x4d   :  { %295 = vmatmul.mubr.f32.gmra.mrb[2].mxu0 %v43_v18  ;;  %301 = vmatmul.mubr.f32.gmra.mrb[2].mxu1 %v47_v27 }
  0xba   :  { %v53_v32 = vpop.xlane.xlu1 %52  ;;  %v49_v33 = vpop.xlane.xlu0 %48 }
  0xbb   :  { %v185_v43 = vmax.f32 %v49_v33, 1.0  ;;  %v187_v47 = vmax.f32 %v53_v32, 1.0 }
  0xbe   :  { %v55_v34 = vpop.xlane.xlu1 %54  ;;  %v51_v35 = vpop.xlane.xlu0 %50 }
  0xbf   :  { %v186_v41 = vmax.f32 %v51_v35, 1.0  ;;  %v188_v46 = vmax.f32 %v55_v34, 1.0 }
  0xc2   :  { %v59_v36 = vpop.xlane.xlu1 %58  ;;  %v57_v37 = vpop.xlane.xlu0 %56 }
  0xc3   :  { %v190_v38 = vmax.f32 %v59_v36, 1.0  ;;  %v189_v39 = vmax.f32 %v57_v37, 1.0 }
  0xc5   :  { %356 = vrcp.f32 %v190_v38 }
  0xc6   :  { %v63_v40 = vpop.xlane.xlu1 %62  ;;  %v61_v42 = vpop.xlane.xlu0 %60  ;;  %358 = vrcp.f32 %v189_v39 }
  0xc7   :  { %v192_v44 = vmax.f32 %v63_v40, 1.0  ;;  %v191_v45 = vmax.f32 %v61_v42, 1.0  ;;  %360 = vrcp.f32 %v186_v41 }
  0xc8   :  { %362 = vrcp.f32 %v185_v43 }
  0xc9   :  { %364 = vrcp.f32 %v192_v44 }
  0xca   :  { %366 = vrcp.f32 %v191_v45 }
  0xcb   :  { %368 = vrcp.f32 %v188_v46 }
  0xcc   :  { %370 = vrcp.f32 %v187_v47 }
  0xcf   :  { %v357_v48 = vpop.eup %356 }
  0xd0   :  { %v359_v49 = vpop.eup %358 }
  0xd1   :  { %v361_v50 = vpop.eup %360 }
  0xd2   :  { %v363_v53 = vpop.eup %362 }
  0xd3   :  { %v365_v58 = vpop.eup %364 }
  0xd4   :  { %v367_v61 = vpop.eup %366 }
  0xd5   :  { %v369_v62 = vpop.eup %368 }
  0xd6   :  { %v371_v1 = vpop.eup %370 }
 0x11c   :  { %v293_v51 = vpop.f32.mrb[0].mxu0  ;;  %v299_v52 = vpop.f32.mrb[0].mxu1 }
 0x11d   :  { %v202_v54 = vmul.f32 %v361_v50, %v293_v51  ;;  %v206_v55 = vmul.f32 %v357_v48, %v299_v52  ;;  %v146_v56 = vpop.f32.mrb[1].mxu0  ;;  %v166_v57 = vpop.f32.mrb[1].mxu1 }
 0x11e   :  { %v201_v59 = vmul.f32 %v363_v53, %v146_v56  ;;  %v205_v60 = vmul.f32 %v359_v49, %v166_v57 }
 0x11f   :  { %210 = vst [vmem:[#allocation7 + $0x8] sm:$0xff] %v202_v54  ;;  %214 = vst [vmem:[#allocation7 + $0x28] sm:$0xff] %v206_v55 }
 0x120   :  { %209 = vst [vmem:[#allocation7] sm:$0xff] %v201_v59  ;;  %213 = vst [vmem:[#allocation7 + $0x20] sm:$0xff] %v205_v60  ;;  %v296_v63 = vpop.f32.mrb[2].mxu0  ;;  %v302_v0 = vpop.f32.mrb[2].mxu1 }
 0x121   :  { %v204_v2 = vmul.f32 %v369_v62, %v296_v63  ;;  %v208_v3 = vmul.f32 %v365_v58, %v302_v0  ;;  %v156_v4 = vpop.f32.mrb[3].mxu0  ;;  %v176_v5 = vpop.f32.mrb[3].mxu1 }
 0x122   :  { %v203_v6 = vmul.f32 %v371_v1, %v156_v4  ;;  %v207_v7 = vmul.f32 %v367_v61, %v176_v5 }
 0x123   :  { %212 = vst [vmem:[#allocation7 + $0x18] sm:$0xff] %v204_v2  ;;  %216 = vst [vmem:[#allocation7 + $0x38] sm:$0xff] %v208_v3 }
 0x124   :  { %211 = vst [vmem:[#allocation7 + $0x10] sm:$0xff] %v203_v6  ;;  %215 = vst [vmem:[#allocation7 + $0x30] sm:$0xff] %v207_v7 }
 0x125   :  { %427 = shalt.err (!%p424_p6)
}
 0x126   :  { %s428_s10 = scalar_lea.hbm %s511_s2, 1024 }
 0x127   :  { %p429_p7 = scmp.ne.s32.totalorder %s511_s2, %s428_s10  ;;  %p432_p8 = scmp.lt.u32.totalorder %s428_s10, %s511_s2 }
 0x129   :  { %p434_p9 = pnand %p432_p8, %p429_p7 }
 0x12b   :  { %437 = shalt.err (!%p434_p9)
}
 0x12c   :  { %228 = dma.vmem_to_hbm [thread:$0]  %s223_s6, 1024, %s511_s2, [#allocation4], %s445_s19, %s445_s19, %s446_s20  }
 0x12d   :  { %442 = dma.done.wait [#allocation4], 1024  }
 0x12e   :  { %443 = vsyncadd [#allocation4], 4294966272 }
 0x12f   :  { %232 = vsyncpa [#allocation3], 1 }
 0x130   :  { %233 = vsyncpa [#allocation6], 1 }
 0x131   :  { %234 = vsyncpa [#allocation4], 1 }

</bundles_post_ra>
